<compile_context>
chip_gen: v6e
topology: v6e:2x2x1
jax: 0.10.0
libtpu: 0.0.40
codegen_flags: <defaults>
</compile_context>

<pallas_src>
import jax
import jax.numpy as jnp
from jax.experimental import pallas as pl
from jax.experimental.pallas import tpu as pltpu


def _gru_gates(gi, gh, h, H):
    """GRU update from fused gate preactivations, PyTorch semantics (r, z, n)."""
    r = jax.nn.sigmoid(gi[:, 0:H] + gh[:, 0:H])
    z = jax.nn.sigmoid(gi[:, H:2 * H] + gh[:, H:2 * H])
    n = jnp.tanh(gi[:, 2 * H:3 * H] + r * gh[:, 2 * H:3 * H])
    return (1.0 - z) * n + z * h


# ---------------- Encoder kernel: masked GRU recurrence (single invocation) --
def encoder_kernel(gi_ref, m_ref, whh_ref, bhh_ref, hout_ref):
    # gi_ref: (S, B, 3H) precomputed x_t @ Wih + bih ; m_ref: (S, B, 1) mask
    S, B, _ = gi_ref.shape
    H = whh_ref.shape[0]

    def step(t, h):
        gh = jnp.dot(h, whh_ref[...],
                     preferred_element_type=jnp.float32) + bhh_ref[...]
        h_new = _gru_gates(gi_ref[t], gh, h, H)
        m = m_ref[t]                              # (B, 1) non-pad mask
        return m * h_new + (1.0 - m) * h          # freeze hidden past seq end

    hout_ref[...] = jax.lax.fori_loop(0, S, step,
                                      jnp.zeros((B, H), jnp.float32))


# ---------------- Decoder kernel: greedy auto-regressive GRU + projection ----
def decoder_kernel(h0_ref, emb_ref, wih_ref, bih_ref, whh_ref, bhh_ref,
                   wout_ref, bout_ref, out_ref):
    T, B, V = out_ref.shape
    H = whh_ref.shape[0]

    # Hoisted out of the recurrence: input-gate preactivations per vocab row.
    gi_table = jnp.dot(emb_ref[...], wih_ref[...],
                       preferred_element_type=jnp.float32) + bih_ref[...]  # (V, 3H)

    col = jax.lax.broadcasted_iota(jnp.int32, (B, V), 1)
    tok0 = (col == (V - 2)).astype(jnp.float32)   # one-hot SOS = num_emb - 2

    def step(t, carry):
        tok, h = carry
        gi = jnp.dot(tok, gi_table, preferred_element_type=jnp.float32)   # (B, 3H)
        gh = jnp.dot(h, whh_ref[...],
                     preferred_element_type=jnp.float32) + bhh_ref[...]
        h_new = _gru_gates(gi, gh, h, H)
        logits = jnp.dot(h_new, wout_ref[...],
                         preferred_element_type=jnp.float32) + bout_ref[...]
        out_ref[t] = logits                       # VMEM-resident slab, 1 final DMA

        # greedy argmax (first max, like torch.argmax) -> one-hot next input
        mx = jnp.max(logits, axis=-1, keepdims=True)
        idx = jnp.min(jnp.where(logits == mx, col, V), axis=-1, keepdims=True)
        return (col == idx).astype(jnp.float32), h_new

    jax.lax.fori_loop(0, T, step, (tok0, h0_ref[...]))


# ---------------- Wrapper ----------------------------------------------------
def seq2seq_forward(src, params, pad_token_id=0, max_len=None):
    B, S = src.shape
    if max_len is None:
        max_len = S + 10                           # matches forward() default

    enc_emb = params["enc_emb"]                    # (V, E)
    enc_wih = params["enc_wih"]                    # (E, 3H)
    enc_whh = params["enc_whh"]                    # (H, 3H)
    H = enc_whh.shape[0]

    # glue: hoisted encoder input-gate table (V,3H), gathered by src tokens.
    enc_gi_table = jnp.dot(enc_emb, enc_wih) + params["enc_bih"]        # (V, 3H)
    gi_all = jnp.take(enc_gi_table, src, axis=0)                        # (B, S, 3H)
    gi_all = jnp.transpose(gi_all, (1, 0, 2)).astype(jnp.float32)       # (S, B, 3H)
    mask = (src != pad_token_id).astype(jnp.float32).T[:, :, None]      # (S, B, 1)

    hidden = pl.pallas_call(
        encoder_kernel,
        out_shape=jax.ShapeDtypeStruct((B, H), jnp.float32),
        grid_spec=pltpu.PrefetchScalarGridSpec(
            num_scalar_prefetch=0,
            grid=(1,),
            in_specs=[
                pl.BlockSpec((S, B, 3 * H), lambda i: (0, 0, 0)),
                pl.BlockSpec((S, B, 1), lambda i: (0, 0, 0)),
                pl.BlockSpec((H, 3 * H), lambda i: (0, 0)),
                pl.BlockSpec((1, 3 * H), lambda i: (0, 0)),
            ],
            out_specs=pl.BlockSpec((B, H), lambda i: (0, 0)),
        ),
        compiler_params=pltpu.CompilerParams(dimension_semantics=("arbitrary",)),
    )(gi_all, mask, enc_whh, params["enc_bhh"])

    dec_emb = params["dec_emb"]
    Vd, Ed = dec_emb.shape
    logits = pl.pallas_call(
        decoder_kernel,
        out_shape=jax.ShapeDtypeStruct((max_len, B, Vd), jnp.float32),
        grid_spec=pltpu.PrefetchScalarGridSpec(
            num_scalar_prefetch=0,
            grid=(1,),
            in_specs=[
                pl.BlockSpec((B, H), lambda i: (0, 0)),
                pl.BlockSpec((Vd, Ed), lambda i: (0, 0)),
                pl.BlockSpec((Ed, 3 * H), lambda i: (0, 0)),
                pl.BlockSpec((1, 3 * H), lambda i: (0, 0)),
                pl.BlockSpec((H, 3 * H), lambda i: (0, 0)),
                pl.BlockSpec((1, 3 * H), lambda i: (0, 0)),
                pl.BlockSpec((H, Vd), lambda i: (0, 0)),
                pl.BlockSpec((1, Vd), lambda i: (0, 0)),
            ],
            out_specs=pl.BlockSpec((max_len, B, Vd), lambda i: (0, 0, 0)),
        ),
        compiler_params=pltpu.CompilerParams(dimension_semantics=("arbitrary",)),
    )(hidden, dec_emb, params["dec_wih"], params["dec_bih"],
      params["dec_whh"], params["dec_bhh"],
      params["dec_wout"], params["dec_bout"])

    return jnp.transpose(logits, (1, 0, 2))        # (B, max_len, V)


def init_params(key, vocab=32, emb=16, hidden=32):
    ks = jax.random.split(key, 12)
    s = 1.0 / float(hidden) ** 0.5
    u = lambda k, shape: jax.random.uniform(k, shape, jnp.float32, -s, s)
    # GRU gate weights stored fused as (in_dim, 3H), gate order (r, z, n),
    # i.e. the transpose of PyTorch's (3H, in_dim) weight_ih / weight_hh.
    return dict(
        enc_emb=jax.random.normal(ks[0], (vocab, emb), jnp.float32) * 0.1,
        enc_wih=u(ks[1], (emb, 3 * hidden)),
        enc_whh=u(ks[2], (hidden, 3 * hidden)),
        enc_bih=u(ks[3], (1, 3 * hidden)),
        enc_bhh=u(ks[4], (1, 3 * hidden)),
        dec_emb=jax.random.normal(ks[5], (vocab, emb), jnp.float32) * 0.1,
        dec_wih=u(ks[6], (emb, 3 * hidden)),
        dec_whh=u(ks[7], (hidden, 3 * hidden)),
        dec_bih=u(ks[8], (1, 3 * hidden)),
        dec_bhh=u(ks[9], (1, 3 * hidden)),
        dec_wout=u(ks[10], (hidden, vocab)),
        dec_bout=u(ks[11], (1, vocab)),
    )


if __name__ == "__main__":
    key = jax.random.PRNGKey(0)
    kp, ks = jax.random.split(key)
    VOCAB, EMB, HID = 32, 16, 32
    B, S = 2, 8

    params = init_params(kp, vocab=VOCAB, emb=EMB, hidden=HID)

    src = jax.random.randint(ks, (B, S), 1, VOCAB - 2, dtype=jnp.int32)
    src = src.at[1, -2:].set(0)                    # pad tail of one sequence

    out = seq2seq_forward(src, params, pad_token_id=0)   # (B, S+10, VOCAB)
    out = jax.block_until_ready(out)

    assert out.shape == (B, S + 10, VOCAB), out.shape
    assert bool(jnp.all(jnp.isfinite(out)))
    print("KERNEL_OK")
</pallas_src>

<mosaic_0001>
module attributes {stable_mosaic.version = 11 : i64} {
  func.func @encoder_kernel(%arg0: i32, %arg1: memref<8x2x96xf32, #tpu.memory_space<vmem>>, %arg2: memref<8x2x1xf32, #tpu.memory_space<vmem>>, %arg3: memref<32x96xf32, #tpu.memory_space<vmem>>, %arg4: memref<1x96xf32, #tpu.memory_space<vmem>>, %arg5: memref<2x32xf32, #tpu.memory_space<vmem>>) attributes {dimension_semantics = [#tpu.dimension_semantics<arbitrary>], iteration_bounds = array<i64: 1>, scalar_prefetch = 0 : i64, scratch_operands = 0 : i64, tpu.core_type = #tpu.core_type<tc>, window_params = [{pipeline_mode = #tpu.pipeline_mode<synchronous>, transform_indices = @transform_0, window_bounds = array<i64: 8, 2, 96>}, {pipeline_mode = #tpu.pipeline_mode<synchronous>, transform_indices = @transform_1, window_bounds = array<i64: 8, 2, 1>}, {pipeline_mode = #tpu.pipeline_mode<synchronous>, transform_indices = @transform_2, window_bounds = array<i64: 32, 96>}, {pipeline_mode = #tpu.pipeline_mode<synchronous>, transform_indices = @transform_3, window_bounds = array<i64: 1, 96>}, {pipeline_mode = #tpu.pipeline_mode<synchronous>, transform_indices = @transform_4, window_bounds = array<i64: 2, 32>}]} {
    %cst = arith.constant 0.000000e+00 : f32
    %0 = vector.broadcast %cst : f32 to vector<2x32xf32>
    %c0_i32 = arith.constant 0 : i32
    %c8_i32 = arith.constant 8 : i32
    %1 = arith.addi %c0_i32, %c8_i32 : i32
    %c1_i32 = arith.constant 1 : i32
    %2 = scf.for %arg6 = %c0_i32 to %1 step %c1_i32 iter_args(%arg7 = %0) -> (vector<2x32xf32>)  : i32 {
      %c0_2 = arith.constant 0 : index
      %c0_3 = arith.constant 0 : index
      %4 = vector.load %arg3[%c0_2, %c0_3] : memref<32x96xf32, #tpu.memory_space<vmem>>, vector<32x96xf32>
      %cst_4 = arith.constant dense<0.000000e+00> : vector<2x96xf32>
      %5 = tpu.matmul %arg7, %4, %cst_4 {dimension_numbers = #tpu.dot_dimension_numbers<[1], [0], [0], [1], [0, 0, 1, 1], [], []>} : vector<2x32xf32>, vector<32x96xf32>, vector<2x96xf32> -> vector<2x96xf32>
      %c0_5 = arith.constant 0 : index
      %c0_6 = arith.constant 0 : index
      %6 = vector.load %arg4[%c0_5, %c0_6] : memref<1x96xf32, #tpu.memory_space<vmem>>, vector<1x96xf32>
      %7 = vector.broadcast %6 : vector<1x96xf32> to vector<2x96xf32>
      %8 = arith.addf %5, %7 : vector<2x96xf32>
      %9 = arith.index_cast %arg6 : i32 to index
      %c0_7 = arith.constant 0 : index
      %c0_8 = arith.constant 0 : index
      %10 = vector.load %arg1[%9, %c0_7, %c0_8] : memref<8x2x96xf32, #tpu.memory_space<vmem>>, vector<1x2x96xf32>
      %11 = vector.shape_cast %10 : vector<1x2x96xf32> to vector<2x96xf32>
      %12 = vector.extract_strided_slice %11 {offsets = [0, 0], sizes = [2, 32], strides = [1, 1]} : vector<2x96xf32> to vector<2x32xf32>
      %13 = vector.extract_strided_slice %8 {offsets = [0, 0], sizes = [2, 32], strides = [1, 1]} : vector<2x96xf32> to vector<2x32xf32>
      %14 = arith.addf %12, %13 : vector<2x32xf32>
      %15 = arith.negf %14 : vector<2x32xf32>
      %16 = math.exp %15 : vector<2x32xf32>
      %cst_9 = arith.constant 1.000000e+00 : f32
      %17 = vector.broadcast %cst_9 : f32 to vector<2x32xf32>
      %18 = arith.addf %17, %16 : vector<2x32xf32>
      %19 = arith.divf %17, %18 : vector<2x32xf32>
      %20 = vector.extract_strided_slice %11 {offsets = [0, 32], sizes = [2, 32], strides = [1, 1]} : vector<2x96xf32> to vector<2x32xf32>
      %21 = vector.extract_strided_slice %8 {offsets = [0, 32], sizes = [2, 32], strides = [1, 1]} : vector<2x96xf32> to vector<2x32xf32>
      %22 = arith.addf %20, %21 : vector<2x32xf32>
      %23 = arith.negf %22 : vector<2x32xf32>
      %24 = math.exp %23 : vector<2x32xf32>
      %cst_10 = arith.constant 1.000000e+00 : f32
      %25 = vector.broadcast %cst_10 : f32 to vector<2x32xf32>
      %26 = arith.addf %25, %24 : vector<2x32xf32>
      %27 = arith.divf %25, %26 : vector<2x32xf32>
      %28 = vector.extract_strided_slice %11 {offsets = [0, 64], sizes = [2, 32], strides = [1, 1]} : vector<2x96xf32> to vector<2x32xf32>
      %29 = vector.extract_strided_slice %8 {offsets = [0, 64], sizes = [2, 32], strides = [1, 1]} : vector<2x96xf32> to vector<2x32xf32>
      %30 = arith.mulf %19, %29 : vector<2x32xf32>
      %31 = arith.addf %28, %30 : vector<2x32xf32>
      %32 = math.tanh %31 : vector<2x32xf32>
      %cst_11 = arith.constant 1.000000e+00 : f32
      %33 = vector.broadcast %cst_11 : f32 to vector<2x32xf32>
      %34 = arith.subf %33, %27 : vector<2x32xf32>
      %35 = arith.mulf %34, %32 : vector<2x32xf32>
      %36 = arith.mulf %27, %arg7 : vector<2x32xf32>
      %37 = arith.addf %35, %36 : vector<2x32xf32>
      %38 = arith.index_cast %arg6 : i32 to index
      %c0_12 = arith.constant 0 : index
      %c0_13 = arith.constant 0 : index
      %39 = vector.load %arg2[%38, %c0_12, %c0_13] : memref<8x2x1xf32, #tpu.memory_space<vmem>>, vector<1x2x1xf32>
      %40 = vector.shape_cast %39 : vector<1x2x1xf32> to vector<2x1xf32>
      %41 = vector.broadcast %40 : vector<2x1xf32> to vector<2x32xf32>
      %42 = arith.mulf %41, %37 : vector<2x32xf32>
      %cst_14 = arith.constant 1.000000e+00 : f32
      %43 = vector.broadcast %cst_14 : f32 to vector<2x1xf32>
      %44 = arith.subf %43, %40 : vector<2x1xf32>
      %45 = vector.broadcast %44 : vector<2x1xf32> to vector<2x32xf32>
      %46 = arith.mulf %45, %arg7 : vector<2x32xf32>
      %47 = arith.addf %42, %46 : vector<2x32xf32>
      scf.yield %47 : vector<2x32xf32>
    }
    %c8_i32_0 = arith.constant 8 : i32
    %c0 = arith.constant 0 : index
    %c0_1 = arith.constant 0 : index
    %3 = vector.load %arg5[%c0, %c0_1] : memref<2x32xf32, #tpu.memory_space<vmem>>, vector<2x32xf32>
    tpu.vector_store %arg5[%c0, %c0_1], %2 {strides = array<i32>} : memref<2x32xf32, #tpu.memory_space<vmem>>, vector<2x32xf32>,
    return
  }
  func.func @transform_0(%arg0: i32) -> (i32, i32, i32) {
    %c0_i32 = arith.constant 0 : i32
    %c0_i32_0 = arith.constant 0 : i32
    %c0_i32_1 = arith.constant 0 : i32
    %c0_i32_2 = arith.constant 0 : i32
    return %c0_i32, %c0_i32_0, %c0_i32_1 : i32, i32, i32
  }
  func.func @transform_1(%arg0: i32) -> (i32, i32, i32) {
    %c0_i32 = arith.constant 0 : i32
    %c0_i32_0 = arith.constant 0 : i32
    %c0_i32_1 = arith.constant 0 : i32
    %c0_i32_2 = arith.constant 0 : i32
    return %c0_i32, %c0_i32_0, %c0_i32_1 : i32, i32, i32
  }
  func.func @transform_2(%arg0: i32) -> (i32, i32) {
    %c0_i32 = arith.constant 0 : i32
    %c0_i32_0 = arith.constant 0 : i32
    %c0_i32_1 = arith.constant 0 : i32
    return %c0_i32, %c0_i32_0 : i32, i32
  }
  func.func @transform_3(%arg0: i32) -> (i32, i32) {
    %c0_i32 = arith.constant 0 : i32
    %c0_i32_0 = arith.constant 0 : i32
    %c0_i32_1 = arith.constant 0 : i32
    return %c0_i32, %c0_i32_0 : i32, i32
  }
  func.func @transform_4(%arg0: i32) -> (i32, i32) {
    %c0_i32 = arith.constant 0 : i32
    %c0_i32_0 = arith.constant 0 : i32
    %c0_i32_1 = arith.constant 0 : i32
    return %c0_i32, %c0_i32_0 : i32, i32
  }
}

</mosaic_0001>

<bundles_post_ra>
// kernel: tpu_custom_call.1
= control target key start
LH: loop header
LB: loop body
LE: loop exit
PB: predicated region body
PF: predicated region fallthrough
CT: control target
= control target key end

     0   :  { %9 = vsyncpa [#allocation3], 0  ;;  %s384_s0 = inlined_call_operand.vmem [shape: f32[8,2,96], index: 0, kind: input, shape index: {}]   ;;  %s385_s1 = inlined_call_operand.vmem [shape: f32[8,2,1], index: 1, kind: input, shape index: {}]   ;;  %s386_s2 = inlined_call_operand.hbm [shape: f32[32,96], index: 2, kind: input, shape index: {}]   ;;  %s387_s3 = inlined_call_operand.vmem [shape: f32[1,96], index: 3, kind: input, shape index: {}]   ;;  %s388_s4 = inlined_call_operand.hbm [shape: f32[2,32], index: 4, kind: output, shape index: {}]  }
   0x1   :  { %10 = vsyncpa [#allocation4], 0  ;;  %s318_s15 = smov [#allocation2]  }
   0x2   :  { %s20_s16 = sshll.u32 %s318_s15, 4  ;;  %s21_s16 = int_to_ptr.vmem [resolvable:$true] %s20_s16 }
   0x3   :  { %s266_s17 = scalar_lea.vmem %s21_s16, 512  ;;  %p271_p1 = scmp.lt.s32.totalorder %s21_s16, %s21_s16 }
   0x4   :  { %p267_p0 = scmp.ne.s32.totalorder %s21_s16, %s266_s17  ;;  %p272_p2 = scmp.lt.s32.totalorder %s266_s17, %s266_s17 }
   0x6   :  { %p273_p3 = por %p272_p2, %p271_p1 }
   0x8   :  { %p274_p4 = pnand %p273_p3, %p267_p0 }
   0xa   :  { %277 = shalt.err (!%p274_p4)
}
   0xb   :  { %s319_s18 = smov 128   ;;  %s320_s19 = smov 8  }
   0xc   :  { %26 = dma.hbm_to_vmem [thread:$0]  %s386_s2, 512, %s21_s16, [#allocation3], %s319_s18, %s319_s18, %s320_s19  }
   0xd   :  { %306 = dma.done.wait [#allocation3], 512  }
   0xe   :  { %307 = vsyncadd [#allocation3], 4294966784  ;;  %v356_v0 = vmov 0.0   ;;  %s358_s22 = smov 0  }
   0xf LB: > { %v42_v1 = vld [vmem:[#allocation2 + $0x18] sm:$0xff]  ;;  %v321_v2 = vmov 0.0   ;;  %v41_v3 = vld [vmem:[#allocation2 + $0x10] sm:$0xff]  ;;  %vm322_vm0 = vmmov 0   ;;  %s323_s2 = smov 96   ;;  %v40_v4 = vld [vmem:[#allocation2 + $0x8] sm:$0xff]  ;;  %s316_s22 = sphi %s358_s22, %s37_s22   ;;  %v312_v0 = vphi %v356_v0, %v389_v0  }
  0x10   : > { %213 = vmatprep.subr.mxu0 %v321_v2  ;;  %221 = vmatprep.mubr.msk.f32.mxu0 %vm322_vm0, %v321_v2  ;;  %v39_v5 = vld [vmem:[#allocation2] sm:$0xff]  ;;  %vm53_vm1 = vcmask 261120   ;;  %s324_s25 = smov 64   ;;  %s206_s26 = sshll.u32 %s316_s22, 1  ;;  %v325_v16 = vmov 0  }
  0x11   : > { %51 = vrot.lane.b32.xlu0 %v312_v0, %s323_s2  ;;  %214 = vmatpush3.msra.mxu0 %v42_v1  ;;  %v204_v7 = vld [vmem:[%s387_s3] ss:$0 sm:$0xff]  ;;  %s127_s29 = scalar_lea.vmem %s384_s0, %s206_s26  ;;  %s155_s6 = scalar_lea.vmem %s385_s1, %s206_s26 }
  0x12   : > { %215 = vmatprep.subr.mxu0 %v321_v2  ;;  %v128_v11 = vld [vmem:[%s127_s29] sm:$0x3]  ;;  %250 = vset.pattern.permute.xlu1 %v325_v16  ;;  %s37_s22 = sadd.s32 1, %s316_s22  }
  0x13   : > { %216 = vmatpush3.msra.mxu0 %v41_v3  ;;  %v156_v17 = vld [vmem:[%s155_s6] sm:$0x3]  ;;  %251 = vset.pattern.permute.xlu0 %v325_v16  ;;  %p34_p5 = scmp.ge.s32.totalorder %s37_s22, 8  }
  0x14   : > { %217 = vmatprep.subr.mxu0 %v321_v2  ;;  %v163_v18 = vsub.f32 1.0, %v156_v17  ;;  %s326_s7 = smov (%p34_p5), 96   ;;  %s327_s8 = smov (%p34_p5), [#allocation5]   ;;  %vm175_vm2 = vcmask (%p34_p5), 254976  }
  0x15   : > { %218 = vmatpush3.msra.mxu0 %v40_v4  ;;  %s183_s9 = sshll.u32 (%p34_p5), %s327_s8, 4  ;;  %s184_s9 = int_to_ptr.vmem [resolvable:$true] %s183_s9 }
  0x16   : > { %219 = vmatprep.subr.mxu0 %v321_v2  ;;  %s278_s10 = scalar_lea.vmem (%p34_p5), %s184_s9, 32  ;;  %p283_p7 = scmp.lt.s32.totalorder (%p34_p5), %s184_s9, %s184_s9 }
  0x17   : > { %220 = vmatpush3.msra.mxu0 %v39_v5  ;;  %p279_p6 = scmp.ne.s32.totalorder (%p34_p5), %s184_s9, %s278_s10  ;;  %p284_p8 = scmp.lt.s32.totalorder (%p34_p5), %s278_s10, %s278_s10 }
  0x19   :  { %p285_p9 = por (%p34_p5), %p284_p8, %p283_p7 }
  0x1b   :  { %p286_p10 = pnand (%p34_p5), %p285_p9, %p279_p6 }
  0x83   : > { %v52_v6 = vpop.permute.xlu0 %51 }
  0x84   : > { %222 = vmatmul.mubr.msk.f32.vlgmr.msra.gmra.mxu0 %vm53_vm1, %v52_v6 }
 0x144   : > { %v122_v8 = vpop.f32.mrf.mxu0 }
 0x145   : > { %v123_v9 = vadd.f32 %v204_v7, %v122_v8 }
 0x146   : > { %v223_v10 = vpop.f32.mrf.mxu0 }
 0x147   : > { %137 = vrot.lane.b32.xlu0 %v123_v9, %s324_s25  ;;  %v129_v12 = vadd.f32 %v128_v11, %v123_v9 }
 0x149   : > { %v207_v13 = vmul.f32 -1.442695, %v129_v12 }
 0x14b   : > { %252 = vpow2.f32 %v207_v13  ;;  %166 = vperm.xlu0 %251, %v163_v18  }
 0x158   : > { %v253_v14 = vpop.eup %252 }
 0x159   : > { %v133_v15 = vadd.f32 1.0, %v253_v14 }
 0x15b   : > { %254 = vrcp.f32 %v133_v15 }
 0x168   : > { %v255_v19 = vpop.eup %254 }
 0x169   : > { %v147_v26 = vsub.f32 1.0, %v255_v19  ;;  %v153_v29 = vmul.f32 %v312_v0, %v255_v19 }
 0x1b9   : > { %v138_v20 = vpop.permute.xlu0 %137 }
 0x1ba   : > { %v140_v21 = vmul.f32 %v255_v19, %v138_v20 }
 0x1bc   : > { %142 = vrot.lane.b32.xlu1 %v140_v21, %s324_s25 }
 0x1c0   : > { %159 = vperm.xlu1 %250, %v156_v17  }
 0x1c6   : > { %v167_v28 = vpop.permute.xlu0 %166 }
 0x1c7   : > { %v169_v32 = vmul.f32 %v312_v0, %v167_v28 }
 0x22e   : > { %v143_v22 = vpop.permute.xlu1 %142 }
 0x22f   : > { %v145_v23 = vadd.f32 %v143_v22, %v128_v11 }
 0x231   : > { %256 = vtanh.f32 %v145_v23 }
 0x23b   : > { %v160_v25 = vpop.permute.xlu1 %159 }
 0x23e   : > { %v257_v24 = vpop.eup %256 }
 0x23f   : > { %149 = vrot.lane.b32.xlu1 %v257_v24, %s323_s2 }
 0x2b1   : > { %v150_v27 = vpop.permute.xlu1 %149 }
 0x2b2   : > { %v152_v30 = vmul.f32 %v150_v27, %v147_v26 }
 0x2b4   : > { %v154_v31 = vadd.f32 %v153_v29, %v152_v30 }
 0x2b6   : > { %v162_v33 = vmul.f32 %v160_v25, %v154_v31  ;;  %36 = sbr.rel (!%p34_p5) target bundleno = 15 (0xf), region = 49 }
 0x2b8   : > { %v170_v34 = vadd.f32 %v169_v32, %v162_v33  }
 0x2ba   : > { %v389_v0 = vmov %v170_v34  ;;  %172 = vrot.lane.b32.xlu0 (%p34_p5), %v170_v34, %s326_s7 }
 0x32c   :  { %v173_v35 = vpop.permute.xlu0 %172 }
 0x32d   :  { %176 = vst.msk [vmem:[#allocation5] sm:$0x3] %vm175_vm2, %v173_v35 }
 0x32e   :  { %289 = shalt.err (!%p286_p10)
}
 0x32f   :  { %186 = dma.vmem_to_hbm [thread:$0]  %s184_s9, 32, %s388_s4, [#allocation4]  }
 0x330   :  { %308 = dma.done.wait [#allocation4], 32  }
 0x331   :  { %309 = vsyncadd [#allocation4], 4294967264 }
 0x332   :  { %190 = vsyncpa [#allocation3], 1 }
 0x333   :  { %191 = vsyncpa [#allocation4], 1 }

</bundles_post_ra>
